<compile_context>
chip_gen: v7x
topology: tpu7x:2x2x1
jax: 0.10.0
libtpu: 0.0.40
codegen_flags: <defaults>
</compile_context>

<pallas_src>
import jax
import jax.numpy as jnp
import numpy as np
from jax.experimental import pallas as pl
from jax.experimental.pallas import tpu as pltpu


# ----------------------------------------------------------------------------
# Weight-slab layout (shared by host packing and the kernel)
# ----------------------------------------------------------------------------
def _pad8(n):
    return ((n + 7) // 8) * 8


def _slab_layout(num_layers, hidden, input_size, fc_shapes):
    """Row offsets of every packed tensor inside the single weight slab."""
    N = 4 * num_layers * hidden
    layout = {}
    r = 0

    def add(name, rows, cols):
        nonlocal r
        layout[name] = (r, rows, cols)
        r += _pad8(rows)

    add("w_big", num_layers * hidden, N)   # fused recurrent + coupling weights
    add("wih0", input_size, N)             # layer-0 input proj (gate-major cols)
    add("bias", 1, N)                      # all layers' (b_ih + b_hh)
    for i, (fi, fo) in enumerate(fc_shapes):
        add(f"fc{i}_w", fi, fo)
        add(f"fc{i}_b", 1, fo)
    return layout, r, N


# ----------------------------------------------------------------------------
# Fused Pallas kernel
# ----------------------------------------------------------------------------
def _make_kernel(num_layers, T, B, input_size, H, fc_shapes):
    L = num_layers
    LH = L * H
    N = 4 * LH
    layout, _, _ = _slab_layout(L, H, input_size, fc_shapes)

    def kernel(x_ref, slab_ref, o_ref, xtm_ref):
        f32 = jnp.float32

        def take(name):
            r0, nr, nc = layout[name]
            return slab_ref[r0:r0 + nr, 0:nc]          # static slices

        w_big = take("w_big")                          # (L*H, 4*L*H)
        wih0 = take("wih0")                            # (I,   4*L*H)
        bias = take("bias")                            # (1,   4*L*H)

        # ---- stage x (B, T, I) -> time-major (T*B, I) via VMEM scratch -----
        xs = x_ref[...].astype(f32)
        for t in range(T):
            xtm_ref[t * B:(t + 1) * B, :] = xs[:, t, :]
        seq_tb = xtm_ref[...]                          # rows ordered t*B + b

        # ---- cuDNN-style precompute: layer-0 input proj + all biases -------
        xg = jnp.dot(seq_tb, wih0, preferred_element_type=f32) + bias  # (T*B, N)

        # ---- (layer, time) wavefront recurrence -----------------------------
        hc = jnp.zeros((B, LH), f32)                   # [h_0 | ... | h_{L-1}]
        cc = jnp.zeros((B, LH), f32)                   # [c_0 | ... | c_{L-1}]
        lanes = jax.lax.broadcasted_iota(jnp.int32, (B, LH), 1)

        for s in range(T + L - 1):
            # One fused block matmul: every active layer's h_prev @ W_hh AND
            # the next layer's input projection (h_{l-1} @ W_ih_l).
            rec = jnp.dot(hc, w_big, preferred_element_type=f32)       # (B, N)
            t0 = min(s, T - 1)     # layer-0 time index (clamped; masked below)
            gates = xg[t0 * B:(t0 + 1) * B, :] + rec                   # (B, N)

            # Two whole-vreg activation passes (gate-type-major columns).
            sg = jax.nn.sigmoid(gates)
            th = jnp.tanh(gates)
            i_cat = sg[:, 0 * LH:1 * LH]
            f_cat = sg[:, 1 * LH:2 * LH]
            g_cat = th[:, 2 * LH:3 * LH]
            o_cat = sg[:, 3 * LH:4 * LH]

            cc_new = f_cat * cc + i_cat * g_cat        # both layers at once
            hc_new = o_cat * jnp.tanh(cc_new)          # single tanh(c)

            lo = max(0, s - (T - 1))                   # active layers lo..hi
            hi = min(s, L - 1)
            if lo == 0 and hi == L - 1:                # interior steps: no mask
                cc, hc = cc_new, hc_new
            else:                                      # wavefront edges only
                m = (lanes >= lo * H) & (lanes < (hi + 1) * H)
                cc = jnp.where(m, cc_new, cc)
                hc = jnp.where(m, hc_new, hc)

        # ---- MLP head on hn[-1] == last layer's final h; stays in VMEM -----
        h_last = hc[:, (L - 1) * H:L * H]              # (B, H)
        z = jnp.maximum(
            jnp.dot(h_last, take("fc0_w"), preferred_element_type=f32)
            + take("fc0_b"), 0.0)
        z = jnp.maximum(
            jnp.dot(z, take("fc1_w"), preferred_element_type=f32)
            + take("fc1_b"), 0.0)
        # self.dropout (p=0.1) is identity in eval mode
        z = jnp.dot(z, take("fc2_w"), preferred_element_type=f32) + take("fc2_b")
        o_ref[...] = z.astype(o_ref.dtype)             # (B, 1)

    return kernel


# ----------------------------------------------------------------------------
# Host-side packing + wrapper
# ----------------------------------------------------------------------------
def pack_params(params):
    """Pack all weights into one (rows, 4*L*H) f32 slab, gate-type-major
    columns, with the wavefront-fused W_big built block-wise."""
    L = len(params["lstm"])
    H = int(params["lstm"][0]["w_hh_t"].shape[0])
    I = int(params["lstm"][0]["w_ih_t"].shape[0])
    fc_shapes = tuple((int(w.shape[0]), int(w.shape[1])) for w, _ in params["fc"])
    layout, rows, N = _slab_layout(L, H, I, fc_shapes)
    LH = L * H
    slab = np.zeros((rows, N), np.float32)

    def put(name, arr):
        r0, nr, nc = layout[name]
        slab[r0:r0 + nr, 0:nc] = np.asarray(arr, np.float32).reshape(nr, nc)

    w_big = np.zeros((LH, N), np.float32)
    wih0 = np.zeros((I, N), np.float32)
    bias = np.zeros((1, N), np.float32)
    for l, lp in enumerate(params["lstm"]):
        w_ih = np.asarray(lp["w_ih_t"], np.float32)    # (in, 4H), gates [i,f,g,o]
        w_hh = np.asarray(lp["w_hh_t"], np.float32)    # (H, 4H)
        b = np.asarray(lp["b"], np.float32).reshape(4 * H)
        for k in range(4):                             # gate k in [i, f, g, o]
            src = slice(k * H, (k + 1) * H)
            c = k * LH + l * H                         # gate-major column block
            w_big[l * H:(l + 1) * H, c:c + H] = w_hh[:, src]          # W_hh_l
            if l == 0:
                wih0[:, c:c + H] = w_ih[:, src]                       # x @ W_ih_0
            else:
                # W_ih_l couples the freshly produced h_{l-1} into layer l
                w_big[(l - 1) * H:l * H, c:c + H] = w_ih[:, src]
            bias[0, c:c + H] = b[src]
    put("w_big", w_big)
    put("wih0", wih0)
    put("bias", bias)
    for i, (w, bb) in enumerate(params["fc"]):
        put(f"fc{i}_w", w)
        put(f"fc{i}_b", bb)
    return jnp.asarray(slab)


def make_forward(input_size, hidden_size, num_layers, fc_shapes=None):
    if fc_shapes is None:
        fc_shapes = ((hidden_size, 16), (16, 8), (8, 1))   # fixed by the module

    @jax.jit
    def forward(x_bti, slab):
        B, T, I = x_bti.shape
        kernel = _make_kernel(num_layers, T, B, I, hidden_size, fc_shapes)
        return pl.pallas_call(
            kernel,
            out_shape=jax.ShapeDtypeStruct((B, 1), jnp.float32),
            scratch_shapes=[pltpu.VMEM((T * B, I), jnp.float32)],
        )(x_bti.astype(jnp.float32), slab)

    return forward


# ----------------------------------------------------------------------------
# Parameter init (PyTorch-style) + pure-JAX reference for validation
# ----------------------------------------------------------------------------
def init_params(key, input_size, hidden_size, num_layers):
    params = {"lstm": [], "fc": []}
    H = hidden_size
    k_lstm = 1.0 / np.sqrt(H)
    for layer in range(num_layers):
        in_sz = input_size if layer == 0 else hidden_size
        key, k1, k2, k3, k4 = jax.random.split(key, 5)
        w_ih = jax.random.uniform(k1, (4 * H, in_sz), jnp.float32, -k_lstm, k_lstm)
        w_hh = jax.random.uniform(k2, (4 * H, H), jnp.float32, -k_lstm, k_lstm)
        b_ih = jax.random.uniform(k3, (4 * H,), jnp.float32, -k_lstm, k_lstm)
        b_hh = jax.random.uniform(k4, (4 * H,), jnp.float32, -k_lstm, k_lstm)
        params["lstm"].append(
            dict(w_ih_t=w_ih.T,                        # (in_sz, 4H)
                 w_hh_t=w_hh.T,                        # (H, 4H)
                 b=(b_ih + b_hh).reshape(1, 4 * H)))   # (1, 4H)
    for (fan_in, fan_out) in [(H, 16), (16, 8), (8, 1)]:
        key, k1, k2 = jax.random.split(key, 3)
        kk = 1.0 / np.sqrt(fan_in)
        w = jax.random.uniform(k1, (fan_in, fan_out), jnp.float32, -kk, kk)
        b = jax.random.uniform(k2, (1, fan_out), jnp.float32, -kk, kk)
        params["fc"].append((w, b))
    return params


def lstm_model_reference(x_bti, params):
    x = jnp.transpose(x_bti, (1, 0, 2)).astype(jnp.float32)
    for lp in params["lstm"]:
        H = lp["w_hh_t"].shape[0]
        B = x.shape[1]

        def step(carry, x_t, lp=lp, H=H):
            h, c = carry
            gates = x_t @ lp["w_ih_t"] + h @ lp["w_hh_t"] + lp["b"]
            i = jax.nn.sigmoid(gates[:, 0 * H:1 * H])
            f = jax.nn.sigmoid(gates[:, 1 * H:2 * H])
            g = jnp.tanh(gates[:, 2 * H:3 * H])
            o = jax.nn.sigmoid(gates[:, 3 * H:4 * H])
            c = f * c + i * g
            h = o * jnp.tanh(c)
            return (h, c), h

        init = (jnp.zeros((B, H), jnp.float32), jnp.zeros((B, H), jnp.float32))
        _, x = jax.lax.scan(step, init, x)
    h_last = x[-1]
    (w1, b1), (w2, b2), (w3, b3) = params["fc"]
    out = jnp.maximum(h_last @ w1 + b1, 0.0)
    out = jnp.maximum(out @ w2 + b2, 0.0)
    return out @ w3 + b3


if __name__ == "__main__":
    INPUT_SIZE = 4
    HIDDEN_SIZE = 32
    NUM_LAYERS = 2
    BATCH = 2
    SEQ = 8

    key = jax.random.PRNGKey(0)
    key, kx, kp = jax.random.split(key, 3)
    x = jax.random.normal(kx, (BATCH, SEQ, INPUT_SIZE), jnp.float32)
    params = init_params(kp, INPUT_SIZE, HIDDEN_SIZE, NUM_LAYERS)
    slab = pack_params(params)

    forward = make_forward(INPUT_SIZE, HIDDEN_SIZE, NUM_LAYERS)
    out = jax.block_until_ready(forward(x, slab))
    ref = jax.block_until_ready(lstm_model_reference(x, params))

    assert out.shape == (BATCH, 1), out.shape
    np.testing.assert_allclose(np.asarray(out), np.asarray(ref),
                               rtol=1e-4, atol=1e-4)
    print("KERNEL_OK")
</pallas_src>

<mosaic_0001>
module attributes {stable_mosaic.version = 11 : i64} {
  func.func @kernel(%arg0: memref<2x8x4xf32, #tpu.memory_space<vmem>>, %arg1: memref<160x256xf32, #tpu.memory_space<vmem>>, %arg2: memref<2x1xf32, #tpu.memory_space<vmem>>, %arg3: memref<16x4xf32, #tpu.memory_space<vmem>>) attributes {dimension_semantics = [], scalar_prefetch = 0 : i64, scratch_operands = 1 : i64, tpu.core_type = #tpu.core_type<tc>} {
    %c0 = arith.constant 0 : index
    %c0_0 = arith.constant 0 : index
    %0 = vector.load %arg1[%c0, %c0_0] : memref<160x256xf32, #tpu.memory_space<vmem>>, vector<64x256xf32>
    %c64 = arith.constant 64 : index
    %c0_1 = arith.constant 0 : index
    %1 = vector.load %arg1[%c64, %c0_1] : memref<160x256xf32, #tpu.memory_space<vmem>>, vector<4x256xf32>
    %c72 = arith.constant 72 : index
    %c0_2 = arith.constant 0 : index
    %2 = vector.load %arg1[%c72, %c0_2] : memref<160x256xf32, #tpu.memory_space<vmem>>, vector<1x256xf32>
    %c0_3 = arith.constant 0 : index
    %c0_4 = arith.constant 0 : index
    %c0_5 = arith.constant 0 : index
    %3 = vector.load %arg0[%c0_3, %c0_4, %c0_5] : memref<2x8x4xf32, #tpu.memory_space<vmem>>, vector<2x8x4xf32>
    %4 = vector.extract_strided_slice %3 {offsets = [0, 0, 0], sizes = [2, 1, 4], strides = [1, 1, 1]} : vector<2x8x4xf32> to vector<2x1x4xf32>
    %5 = vector.shape_cast %4 : vector<2x1x4xf32> to vector<2x4xf32>
    %c0_6 = arith.constant 0 : index
    %c0_7 = arith.constant 0 : index
    %6 = vector.load %arg3[%c0_6, %c0_7] : memref<16x4xf32, #tpu.memory_space<vmem>>, vector<2x4xf32>
    tpu.vector_store %arg3[%c0_6, %c0_7], %5 {strides = array<i32>} : memref<16x4xf32, #tpu.memory_space<vmem>>, vector<2x4xf32>,
    %7 = vector.extract_strided_slice %3 {offsets = [0, 1, 0], sizes = [2, 1, 4], strides = [1, 1, 1]} : vector<2x8x4xf32> to vector<2x1x4xf32>
    %8 = vector.shape_cast %7 : vector<2x1x4xf32> to vector<2x4xf32>
    %c2 = arith.constant 2 : index
    %c0_8 = arith.constant 0 : index
    %9 = vector.load %arg3[%c2, %c0_8] : memref<16x4xf32, #tpu.memory_space<vmem>>, vector<2x4xf32>
    tpu.vector_store %arg3[%c2, %c0_8], %8 {strides = array<i32>} : memref<16x4xf32, #tpu.memory_space<vmem>>, vector<2x4xf32>,
    %10 = vector.extract_strided_slice %3 {offsets = [0, 2, 0], sizes = [2, 1, 4], strides = [1, 1, 1]} : vector<2x8x4xf32> to vector<2x1x4xf32>
    %11 = vector.shape_cast %10 : vector<2x1x4xf32> to vector<2x4xf32>
    %c4 = arith.constant 4 : index
    %c0_9 = arith.constant 0 : index
    %12 = vector.load %arg3[%c4, %c0_9] : memref<16x4xf32, #tpu.memory_space<vmem>>, vector<2x4xf32>
    tpu.vector_store %arg3[%c4, %c0_9], %11 {strides = array<i32>} : memref<16x4xf32, #tpu.memory_space<vmem>>, vector<2x4xf32>,
    %13 = vector.extract_strided_slice %3 {offsets = [0, 3, 0], sizes = [2, 1, 4], strides = [1, 1, 1]} : vector<2x8x4xf32> to vector<2x1x4xf32>
    %14 = vector.shape_cast %13 : vector<2x1x4xf32> to vector<2x4xf32>
    %c6 = arith.constant 6 : index
    %c0_10 = arith.constant 0 : index
    %15 = vector.load %arg3[%c6, %c0_10] : memref<16x4xf32, #tpu.memory_space<vmem>>, vector<2x4xf32>
    tpu.vector_store %arg3[%c6, %c0_10], %14 {strides = array<i32>} : memref<16x4xf32, #tpu.memory_space<vmem>>, vector<2x4xf32>,
    %16 = vector.extract_strided_slice %3 {offsets = [0, 4, 0], sizes = [2, 1, 4], strides = [1, 1, 1]} : vector<2x8x4xf32> to vector<2x1x4xf32>
    %17 = vector.shape_cast %16 : vector<2x1x4xf32> to vector<2x4xf32>
    %c8 = arith.constant 8 : index
    %c0_11 = arith.constant 0 : index
    %18 = vector.load %arg3[%c8, %c0_11] : memref<16x4xf32, #tpu.memory_space<vmem>>, vector<2x4xf32>
    tpu.vector_store %arg3[%c8, %c0_11], %17 {strides = array<i32>} : memref<16x4xf32, #tpu.memory_space<vmem>>, vector<2x4xf32>,
    %19 = vector.extract_strided_slice %3 {offsets = [0, 5, 0], sizes = [2, 1, 4], strides = [1, 1, 1]} : vector<2x8x4xf32> to vector<2x1x4xf32>
    %20 = vector.shape_cast %19 : vector<2x1x4xf32> to vector<2x4xf32>
    %c10 = arith.constant 10 : index
    %c0_12 = arith.constant 0 : index
    %21 = vector.load %arg3[%c10, %c0_12] : memref<16x4xf32, #tpu.memory_space<vmem>>, vector<2x4xf32>
    tpu.vector_store %arg3[%c10, %c0_12], %20 {strides = array<i32>} : memref<16x4xf32, #tpu.memory_space<vmem>>, vector<2x4xf32>,
    %22 = vector.extract_strided_slice %3 {offsets = [0, 6, 0], sizes = [2, 1, 4], strides = [1, 1, 1]} : vector<2x8x4xf32> to vector<2x1x4xf32>
    %23 = vector.shape_cast %22 : vector<2x1x4xf32> to vector<2x4xf32>
    %c12 = arith.constant 12 : index
    %c0_13 = arith.constant 0 : index
    %24 = vector.load %arg3[%c12, %c0_13] : memref<16x4xf32, #tpu.memory_space<vmem>>, vector<2x4xf32>
    tpu.vector_store %arg3[%c12, %c0_13], %23 {strides = array<i32>} : memref<16x4xf32, #tpu.memory_space<vmem>>, vector<2x4xf32>,
    %25 = vector.extract_strided_slice %3 {offsets = [0, 7, 0], sizes = [2, 1, 4], strides = [1, 1, 1]} : vector<2x8x4xf32> to vector<2x1x4xf32>
    %26 = vector.shape_cast %25 : vector<2x1x4xf32> to vector<2x4xf32>
    %c14 = arith.constant 14 : index
    %c0_14 = arith.constant 0 : index
    %27 = vector.load %arg3[%c14, %c0_14] : memref<16x4xf32, #tpu.memory_space<vmem>>, vector<2x4xf32>
    tpu.vector_store %arg3[%c14, %c0_14], %26 {strides = array<i32>} : memref<16x4xf32, #tpu.memory_space<vmem>>, vector<2x4xf32>,
    %c0_15 = arith.constant 0 : index
    %c0_16 = arith.constant 0 : index
    %28 = vector.load %arg3[%c0_15, %c0_16] : memref<16x4xf32, #tpu.memory_space<vmem>>, vector<16x4xf32>
    %cst = arith.constant dense<0.000000e+00> : vector<16x256xf32>
    %29 = tpu.matmul %28, %1, %cst {dimension_numbers = #tpu.dot_dimension_numbers<[1], [0], [0], [1], [0, 0, 1, 1], [], []>} : vector<16x4xf32>, vector<4x256xf32>, vector<16x256xf32> -> vector<16x256xf32>
    %30 = vector.broadcast %2 : vector<1x256xf32> to vector<16x256xf32>
    %31 = arith.addf %29, %30 : vector<16x256xf32>
    %cst_17 = arith.constant 0.000000e+00 : f32
    %32 = vector.broadcast %cst_17 : f32 to vector<2x64xf32>
    %cst_18 = arith.constant 0.000000e+00 : f32
    %33 = vector.broadcast %cst_18 : f32 to vector<2x64xf32>
    %34 = tpu.iota {dimensions = array<i32: 1>} : vector<2x64xi32>
    %cst_19 = arith.constant dense<0.000000e+00> : vector<2x256xf32>
    %35 = tpu.matmul %32, %0, %cst_19 {dimension_numbers = #tpu.dot_dimension_numbers<[1], [0], [0], [1], [0, 0, 1, 1], [], []>} : vector<2x64xf32>, vector<64x256xf32>, vector<2x256xf32> -> vector<2x256xf32>
    %36 = vector.extract_strided_slice %31 {offsets = [0, 0], sizes = [2, 256], strides = [1, 1]} : vector<16x256xf32> to vector<2x256xf32>
    %37 = arith.addf %36, %35 : vector<2x256xf32>
    %38 = arith.negf %37 : vector<2x256xf32>
    %39 = math.exp %38 : vector<2x256xf32>
    %cst_20 = arith.constant 1.000000e+00 : f32
    %40 = vector.broadcast %cst_20 : f32 to vector<2x256xf32>
    %41 = arith.addf %40, %39 : vector<2x256xf32>
    %42 = arith.divf %40, %41 : vector<2x256xf32>
    %43 = math.tanh %37 : vector<2x256xf32>
    %44 = vector.extract_strided_slice %42 {offsets = [0, 0], sizes = [2, 64], strides = [1, 1]} : vector<2x256xf32> to vector<2x64xf32>
    %45 = vector.extract_strided_slice %42 {offsets = [0, 64], sizes = [2, 64], strides = [1, 1]} : vector<2x256xf32> to vector<2x64xf32>
    %46 = vector.extract_strided_slice %43 {offsets = [0, 128], sizes = [2, 64], strides = [1, 1]} : vector<2x256xf32> to vector<2x64xf32>
    %47 = vector.extract_strided_slice %42 {offsets = [0, 192], sizes = [2, 64], strides = [1, 1]} : vector<2x256xf32> to vector<2x64xf32>
    %48 = arith.mulf %45, %33 : vector<2x64xf32>
    %49 = arith.mulf %44, %46 : vector<2x64xf32>
    %50 = arith.addf %48, %49 : vector<2x64xf32>
    %51 = math.tanh %50 : vector<2x64xf32>
    %52 = arith.mulf %47, %51 : vector<2x64xf32>
    %c0_i32 = arith.constant 0 : i32
    %53 = vector.broadcast %c0_i32 : i32 to vector<2x64xi32>
    %54 = arith.cmpi sge, %34, %53 : vector<2x64xi32>
    %c32_i32 = arith.constant 32 : i32
    %55 = vector.broadcast %c32_i32 : i32 to vector<2x64xi32>
    %56 = arith.cmpi slt, %34, %55 : vector<2x64xi32>
    %57 = arith.andi %54, %56 : vector<2x64xi1>
    %58 = arith.select %57, %50, %33 : vector<2x64xi1>, vector<2x64xf32>
    %59 = arith.select %57, %52, %32 : vector<2x64xi1>, vector<2x64xf32>
    %cst_21 = arith.constant dense<0.000000e+00> : vector<2x256xf32>
    %60 = tpu.matmul %59, %0, %cst_21 {dimension_numbers = #tpu.dot_dimension_numbers<[1], [0], [0], [1], [0, 0, 1, 1], [], []>} : vector<2x64xf32>, vector<64x256xf32>, vector<2x256xf32> -> vector<2x256xf32>
    %61 = vector.extract_strided_slice %31 {offsets = [2, 0], sizes = [2, 256], strides = [1, 1]} : vector<16x256xf32> to vector<2x256xf32>
    %62 = arith.addf %61, %60 : vector<2x256xf32>
    %63 = arith.negf %62 : vector<2x256xf32>
    %64 = math.exp %63 : vector<2x256xf32>
    %cst_22 = arith.constant 1.000000e+00 : f32
    %65 = vector.broadcast %cst_22 : f32 to vector<2x256xf32>
    %66 = arith.addf %65, %64 : vector<2x256xf32>
    %67 = arith.divf %65, %66 : vector<2x256xf32>
    %68 = math.tanh %62 : vector<2x256xf32>
    %69 = vector.extract_strided_slice %67 {offsets = [0, 0], sizes = [2, 64], strides = [1, 1]} : vector<2x256xf32> to vector<2x64xf32>
    %70 = vector.extract_strided_slice %67 {offsets = [0, 64], sizes = [2, 64], strides = [1, 1]} : vector<2x256xf32> to vector<2x64xf32>
    %71 = vector.extract_strided_slice %68 {offsets = [0, 128], sizes = [2, 64], strides = [1, 1]} : vector<2x256xf32> to vector<2x64xf32>
    %72 = vector.extract_strided_slice %67 {offsets = [0, 192], sizes = [2, 64], strides = [1, 1]} : vector<2x256xf32> to vector<2x64xf32>
    %73 = arith.mulf %70, %58 : vector<2x64xf32>
    %74 = arith.mulf %69, %71 : vector<2x64xf32>
    %75 = arith.addf %73, %74 : vector<2x64xf32>
    %76 = math.tanh %75 : vector<2x64xf32>
    %77 = arith.mulf %72, %76 : vector<2x64xf32>
    %cst_23 = arith.constant dense<0.000000e+00> : vector<2x256xf32>
    %78 = tpu.matmul %77, %0, %cst_23 {dimension_numbers = #tpu.dot_dimension_numbers<[1], [0], [0], [1], [0, 0, 1, 1], [], []>} : vector<2x64xf32>, vector<64x256xf32>, vector<2x256xf32> -> vector<2x256xf32>
    %79 = vector.extract_strided_slice %31 {offsets = [4, 0], sizes = [2, 256], strides = [1, 1]} : vector<16x256xf32> to vector<2x256xf32>
    %80 = arith.addf %79, %78 : vector<2x256xf32>
    %81 = arith.negf %80 : vector<2x256xf32>
    %82 = math.exp %81 : vector<2x256xf32>
    %cst_24 = arith.constant 1.000000e+00 : f32
    %83 = vector.broadcast %cst_24 : f32 to vector<2x256xf32>
    %84 = arith.addf %83, %82 : vector<2x256xf32>
    %85 = arith.divf %83, %84 : vector<2x256xf32>
    %86 = math.tanh %80 : vector<2x256xf32>
    %87 = vector.extract_strided_slice %85 {offsets = [0, 0], sizes = [2, 64], strides = [1, 1]} : vector<2x256xf32> to vector<2x64xf32>
    %88 = vector.extract_strided_slice %85 {offsets = [0, 64], sizes = [2, 64], strides = [1, 1]} : vector<2x256xf32> to vector<2x64xf32>
    %89 = vector.extract_strided_slice %86 {offsets = [0, 128], sizes = [2, 64], strides = [1, 1]} : vector<2x256xf32> to vector<2x64xf32>
    %90 = vector.extract_strided_slice %85 {offsets = [0, 192], sizes = [2, 64], strides = [1, 1]} : vector<2x256xf32> to vector<2x64xf32>
    %91 = arith.mulf %88, %75 : vector<2x64xf32>
    %92 = arith.mulf %87, %89 : vector<2x64xf32>
    %93 = arith.addf %91, %92 : vector<2x64xf32>
    %94 = math.tanh %93 : vector<2x64xf32>
    %95 = arith.mulf %90, %94 : vector<2x64xf32>
    %cst_25 = arith.constant dense<0.000000e+00> : vector<2x256xf32>
    %96 = tpu.matmul %95, %0, %cst_25 {dimension_numbers = #tpu.dot_dimension_numbers<[1], [0], [0], [1], [0, 0, 1, 1], [], []>} : vector<2x64xf32>, vector<64x256xf32>, vector<2x256xf32> -> vector<2x256xf32>
    %97 = vector.extract_strided_slice %31 {offsets = [6, 0], sizes = [2, 256], strides = [1, 1]} : vector<16x256xf32> to vector<2x256xf32>
    %98 = arith.addf %97, %96 : vector<2x256xf32>
    %99 = arith.negf %98 : vector<2x256xf32>
    %100 = math.exp %99 : vector<2x256xf32>
    %cst_26 = arith.constant 1.000000e+00 : f32
    %101 = vector.broadcast %cst_26 : f32 to vector<2x256xf32>
    %102 = arith.addf %101, %100 : vector<2x256xf32>
    %103 = arith.divf %101, %102 : vector<2x256xf32>
    %104 = math.tanh %98 : vector<2x256xf32>
    %105 = vector.extract_strided_slice %103 {offsets = [0, 0], sizes = [2, 64], strides = [1, 1]} : vector<2x256xf32> to vector<2x64xf32>
    %106 = vector.extract_strided_slice %103 {offsets = [0, 64], sizes = [2, 64], strides = [1, 1]} : vector<2x256xf32> to vector<2x64xf32>
    %107 = vector.extract_strided_slice %104 {offsets = [0, 128], sizes = [2, 64], strides = [1, 1]} : vector<2x256xf32> to vector<2x64xf32>
    %108 = vector.extract_strided_slice %103 {offsets = [0, 192], sizes = [2, 64], strides = [1, 1]} : vector<2x256xf32> to vector<2x64xf32>
    %109 = arith.mulf %106, %93 : vector<2x64xf32>
    %110 = arith.mulf %105, %107 : vector<2x64xf32>
    %111 = arith.addf %109, %110 : vector<2x64xf32>
    %112 = math.tanh %111 : vector<2x64xf32>
    %113 = arith.mulf %108, %112 : vector<2x64xf32>
    %cst_27 = arith.constant dense<0.000000e+00> : vector<2x256xf32>
    %114 = tpu.matmul %113, %0, %cst_27 {dimension_numbers = #tpu.dot_dimension_numbers<[1], [0], [0], [1], [0, 0, 1, 1], [], []>} : vector<2x64xf32>, vector<64x256xf32>, vector<2x256xf32> -> vector<2x256xf32>
    %115 = vector.extract_strided_slice %31 {offsets = [8, 0], sizes = [2, 256], strides = [1, 1]} : vector<16x256xf32> to vector<2x256xf32>
    %116 = arith.addf %115, %114 : vector<2x256xf32>
    %117 = arith.negf %116 : vector<2x256xf32>
    %118 = math.exp %117 : vector<2x256xf32>
    %cst_28 = arith.constant 1.000000e+00 : f32
    %119 = vector.broadcast %cst_28 : f32 to vector<2x256xf32>
    %120 = arith.addf %119, %118 : vector<2x256xf32>
    %121 = arith.divf %119, %120 : vector<2x256xf32>
    %122 = math.tanh %116 : vector<2x256xf32>
    %123 = vector.extract_strided_slice %121 {offsets = [0, 0], sizes = [2, 64], strides = [1, 1]} : vector<2x256xf32> to vector<2x64xf32>
    %124 = vector.extract_strided_slice %121 {offsets = [0, 64], sizes = [2, 64], strides = [1, 1]} : vector<2x256xf32> to vector<2x64xf32>
    %125 = vector.extract_strided_slice %122 {offsets = [0, 128], sizes = [2, 64], strides = [1, 1]} : vector<2x256xf32> to vector<2x64xf32>
    %126 = vector.extract_strided_slice %121 {offsets = [0, 192], sizes = [2, 64], strides = [1, 1]} : vector<2x256xf32> to vector<2x64xf32>
    %127 = arith.mulf %124, %111 : vector<2x64xf32>
    %128 = arith.mulf %123, %125 : vector<2x64xf32>
    %129 = arith.addf %127, %128 : vector<2x64xf32>
    %130 = math.tanh %129 : vector<2x64xf32>
    %131 = arith.mulf %126, %130 : vector<2x64xf32>
    %cst_29 = arith.constant dense<0.000000e+00> : vector<2x256xf32>
    %132 = tpu.matmul %131, %0, %cst_29 {dimension_numbers = #tpu.dot_dimension_numbers<[1], [0], [0], [1], [0, 0, 1, 1], [], []>} : vector<2x64xf32>, vector<64x256xf32>, vector<2x256xf32> -> vector<2x256xf32>
    %133 = vector.extract_strided_slice %31 {offsets = [10, 0], sizes = [2, 256], strides = [1, 1]} : vector<16x256xf32> to vector<2x256xf32>
    %134 = arith.addf %133, %132 : vector<2x256xf32>
    %135 = arith.negf %134 : vector<2x256xf32>
    %136 = math.exp %135 : vector<2x256xf32>
    %cst_30 = arith.constant 1.000000e+00 : f32
    %137 = vector.broadcast %cst_30 : f32 to vector<2x256xf32>
    %138 = arith.addf %137, %136 : vector<2x256xf32>
    %139 = arith.divf %137, %138 : vector<2x256xf32>
    %140 = math.tanh %134 : vector<2x256xf32>
    %141 = vector.extract_strided_slice %139 {offsets = [0, 0], sizes = [2, 64], strides = [1, 1]} : vector<2x256xf32> to vector<2x64xf32>
    %142 = vector.extract_strided_slice %139 {offsets = [0, 64], sizes = [2, 64], strides = [1, 1]} : vector<2x256xf32> to vector<2x64xf32>
    %143 = vector.extract_strided_slice %140 {offsets = [0, 128], sizes = [2, 64], strides = [1, 1]} : vector<2x256xf32> to vector<2x64xf32>
    %144 = vector.extract_strided_slice %139 {offsets = [0, 192], sizes = [2, 64], strides = [1, 1]} : vector<2x256xf32> to vector<2x64xf32>
    %145 = arith.mulf %142, %129 : vector<2x64xf32>
    %146 = arith.mulf %141, %143 : vector<2x64xf32>
    %147 = arith.addf %145, %146 : vector<2x64xf32>
    %148 = math.tanh %147 : vector<2x64xf32>
    %149 = arith.mulf %144, %148 : vector<2x64xf32>
    %cst_31 = arith.constant dense<0.000000e+00> : vector<2x256xf32>
    %150 = tpu.matmul %149, %0, %cst_31 {dimension_numbers = #tpu.dot_dimension_numbers<[1], [0], [0], [1], [0, 0, 1, 1], [], []>} : vector<2x64xf32>, vector<64x256xf32>, vector<2x256xf32> -> vector<2x256xf32>
    %151 = vector.extract_strided_slice %31 {offsets = [12, 0], sizes = [2, 256], strides = [1, 1]} : vector<16x256xf32> to vector<2x256xf32>
    %152 = arith.addf %151, %150 : vector<2x256xf32>
    %153 = arith.negf %152 : vector<2x256xf32>
    %154 = math.exp %153 : vector<2x256xf32>
    %cst_32 = arith.constant 1.000000e+00 : f32
    %155 = vector.broadcast %cst_32 : f32 to vector<2x256xf32>
    %156 = arith.addf %155, %154 : vector<2x256xf32>
    %157 = arith.divf %155, %156 : vector<2x256xf32>
    %158 = math.tanh %152 : vector<2x256xf32>
    %159 = vector.extract_strided_slice %157 {offsets = [0, 0], sizes = [2, 64], strides = [1, 1]} : vector<2x256xf32> to vector<2x64xf32>
    %160 = vector.extract_strided_slice %157 {offsets = [0, 64], sizes = [2, 64], strides = [1, 1]} : vector<2x256xf32> to vector<2x64xf32>
    %161 = vector.extract_strided_slice %158 {offsets = [0, 128], sizes = [2, 64], strides = [1, 1]} : vector<2x256xf32> to vector<2x64xf32>
    %162 = vector.extract_strided_slice %157 {offsets = [0, 192], sizes = [2, 64], strides = [1, 1]} : vector<2x256xf32> to vector<2x64xf32>
    %163 = arith.mulf %160, %147 : vector<2x64xf32>
    %164 = arith.mulf %159, %161 : vector<2x64xf32>
    %165 = arith.addf %163, %164 : vector<2x64xf32>
    %166 = math.tanh %165 : vector<2x64xf32>
    %167 = arith.mulf %162, %166 : vector<2x64xf32>
    %cst_33 = arith.constant dense<0.000000e+00> : vector<2x256xf32>
    %168 = tpu.matmul %167, %0, %cst_33 {dimension_numbers = #tpu.dot_dimension_numbers<[1], [0], [0], [1], [0, 0, 1, 1], [], []>} : vector<2x64xf32>, vector<64x256xf32>, vector<2x256xf32> -> vector<2x256xf32>
    %169 = vector.extract_strided_slice %31 {offsets = [14, 0], sizes = [2, 256], strides = [1, 1]} : vector<16x256xf32> to vector<2x256xf32>
    %170 = arith.addf %169, %168 : vector<2x256xf32>
    %171 = arith.negf %170 : vector<2x256xf32>
    %172 = math.exp %171 : vector<2x256xf32>
    %cst_34 = arith.constant 1.000000e+00 : f32
    %173 = vector.broadcast %cst_34 : f32 to vector<2x256xf32>
    %174 = arith.addf %173, %172 : vector<2x256xf32>
    %175 = arith.divf %173, %174 : vector<2x256xf32>
    %176 = math.tanh %170 : vector<2x256xf32>
    %177 = vector.extract_strided_slice %175 {offsets = [0, 0], sizes = [2, 64], strides = [1, 1]} : vector<2x256xf32> to vector<2x64xf32>
    %178 = vector.extract_strided_slice %175 {offsets = [0, 64], sizes = [2, 64], strides = [1, 1]} : vector<2x256xf32> to vector<2x64xf32>
    %179 = vector.extract_strided_slice %176 {offsets = [0, 128], sizes = [2, 64], strides = [1, 1]} : vector<2x256xf32> to vector<2x64xf32>
    %180 = vector.extract_strided_slice %175 {offsets = [0, 192], sizes = [2, 64], strides = [1, 1]} : vector<2x256xf32> to vector<2x64xf32>
    %181 = arith.mulf %178, %165 : vector<2x64xf32>
    %182 = arith.mulf %177, %179 : vector<2x64xf32>
    %183 = arith.addf %181, %182 : vector<2x64xf32>
    %184 = math.tanh %183 : vector<2x64xf32>
    %185 = arith.mulf %180, %184 : vector<2x64xf32>
    %cst_35 = arith.constant dense<0.000000e+00> : vector<2x256xf32>
    %186 = tpu.matmul %185, %0, %cst_35 {dimension_numbers = #tpu.dot_dimension_numbers<[1], [0], [0], [1], [0, 0, 1, 1], [], []>} : vector<2x64xf32>, vector<64x256xf32>, vector<2x256xf32> -> vector<2x256xf32>
    %187 = vector.extract_strided_slice %31 {offsets = [14, 0], sizes = [2, 256], strides = [1, 1]} : vector<16x256xf32> to vector<2x256xf32>
    %188 = arith.addf %187, %186 : vector<2x256xf32>
    %189 = arith.negf %188 : vector<2x256xf32>
    %190 = math.exp %189 : vector<2x256xf32>
    %cst_36 = arith.constant 1.000000e+00 : f32
    %191 = vector.broadcast %cst_36 : f32 to vector<2x256xf32>
    %192 = arith.addf %191, %190 : vector<2x256xf32>
    %193 = arith.divf %191, %192 : vector<2x256xf32>
    %194 = math.tanh %188 : vector<2x256xf32>
    %195 = vector.extract_strided_slice %193 {offsets = [0, 0], sizes = [2, 64], strides = [1, 1]} : vector<2x256xf32> to vector<2x64xf32>
    %196 = vector.extract_strided_slice %193 {offsets = [0, 64], sizes = [2, 64], strides = [1, 1]} : vector<2x256xf32> to vector<2x64xf32>
    %197 = vector.extract_strided_slice %194 {offsets = [0, 128], sizes = [2, 64], strides = [1, 1]} : vector<2x256xf32> to vector<2x64xf32>
    %198 = vector.extract_strided_slice %193 {offsets = [0, 192], sizes = [2, 64], strides = [1, 1]} : vector<2x256xf32> to vector<2x64xf32>
    %199 = arith.mulf %196, %183 : vector<2x64xf32>
    %200 = arith.mulf %195, %197 : vector<2x64xf32>
    %201 = arith.addf %199, %200 : vector<2x64xf32>
    %202 = math.tanh %201 : vector<2x64xf32>
    %203 = arith.mulf %198, %202 : vector<2x64xf32>
    %c32_i32_37 = arith.constant 32 : i32
    %204 = vector.broadcast %c32_i32_37 : i32 to vector<2x64xi32>
    %205 = arith.cmpi sge, %34, %204 : vector<2x64xi32>
    %c64_i32 = arith.constant 64 : i32
    %206 = vector.broadcast %c64_i32 : i32 to vector<2x64xi32>
    %207 = arith.cmpi slt, %34, %206 : vector<2x64xi32>
    %208 = arith.andi %205, %207 : vector<2x64xi1>
    %209 = arith.select %208, %203, %185 : vector<2x64xi1>, vector<2x64xf32>
    %210 = vector.extract_strided_slice %209 {offsets = [0, 32], sizes = [2, 32], strides = [1, 1]} : vector<2x64xf32> to vector<2x32xf32>
    %c80 = arith.constant 80 : index
    %c0_38 = arith.constant 0 : index
    %211 = vector.load %arg1[%c80, %c0_38] : memref<160x256xf32, #tpu.memory_space<vmem>>, vector<32x16xf32>
    %cst_39 = arith.constant dense<0.000000e+00> : vector<2x16xf32>
    %212 = tpu.matmul %210, %211, %cst_39 {dimension_numbers = #tpu.dot_dimension_numbers<[1], [0], [0], [1], [0, 0, 1, 1], [], []>} : vector<2x32xf32>, vector<32x16xf32>, vector<2x16xf32> -> vector<2x16xf32>
    %c112 = arith.constant 112 : index
    %c0_40 = arith.constant 0 : index
    %213 = vector.load %arg1[%c112, %c0_40] : memref<160x256xf32, #tpu.memory_space<vmem>>, vector<1x16xf32>
    %214 = vector.broadcast %213 : vector<1x16xf32> to vector<2x16xf32>
    %215 = arith.addf %212, %214 : vector<2x16xf32>
    %cst_41 = arith.constant 0.000000e+00 : f32
    %216 = vector.broadcast %cst_41 : f32 to vector<2x16xf32>
    %217 = arith.maximumf %215, %216 : vector<2x16xf32>
    %c120 = arith.constant 120 : index
    %c0_42 = arith.constant 0 : index
    %218 = vector.load %arg1[%c120, %c0_42] : memref<160x256xf32, #tpu.memory_space<vmem>>, vector<16x8xf32>
    %cst_43 = arith.constant dense<0.000000e+00> : vector<2x8xf32>
    %219 = tpu.matmul %217, %218, %cst_43 {dimension_numbers = #tpu.dot_dimension_numbers<[1], [0], [0], [1], [0, 0, 1, 1], [], []>} : vector<2x16xf32>, vector<16x8xf32>, vector<2x8xf32> -> vector<2x8xf32>
    %c136 = arith.constant 136 : index
    %c0_44 = arith.constant 0 : index
    %220 = vector.load %arg1[%c136, %c0_44] : memref<160x256xf32, #tpu.memory_space<vmem>>, vector<1x8xf32>
    %221 = vector.broadcast %220 : vector<1x8xf32> to vector<2x8xf32>
    %222 = arith.addf %219, %221 : vector<2x8xf32>
    %cst_45 = arith.constant 0.000000e+00 : f32
    %223 = vector.broadcast %cst_45 : f32 to vector<2x8xf32>
    %224 = arith.maximumf %222, %223 : vector<2x8xf32>
    %c144 = arith.constant 144 : index
    %c0_46 = arith.constant 0 : index
    %225 = vector.load %arg1[%c144, %c0_46] : memref<160x256xf32, #tpu.memory_space<vmem>>, vector<8x1xf32>
    %cst_47 = arith.constant dense<0.000000e+00> : vector<2x1xf32>
    %226 = tpu.matmul %224, %225, %cst_47 {dimension_numbers = #tpu.dot_dimension_numbers<[1], [0], [0], [1], [0, 0, 1, 1], [], []>} : vector<2x8xf32>, vector<8x1xf32>, vector<2x1xf32> -> vector<2x1xf32>
    %c152 = arith.constant 152 : index
    %c0_48 = arith.constant 0 : index
    %227 = vector.load %arg1[%c152, %c0_48] : memref<160x256xf32, #tpu.memory_space<vmem>>, vector<1x1xf32>
    %228 = vector.broadcast %227 : vector<1x1xf32> to vector<2x1xf32>
    %229 = arith.addf %226, %228 : vector<2x1xf32>
    %c0_49 = arith.constant 0 : index
    %c0_50 = arith.constant 0 : index
    %230 = vector.load %arg2[%c0_49, %c0_50] : memref<2x1xf32, #tpu.memory_space<vmem>>, vector<2x1xf32>
    tpu.vector_store %arg2[%c0_49, %c0_50], %229 {strides = array<i32>} : memref<2x1xf32, #tpu.memory_space<vmem>>, vector<2x1xf32>,
    return
  }
}

</mosaic_0001>

<bundles_post_ra>
// kernel: forward.1
= control target key start
LH: loop header
LB: loop body
LE: loop exit
PB: predicated region body
PF: predicated region fallthrough
CT: control target
= control target key end

     0   :  { %7 = vsyncpa [#allocation4], 0  ;;  %s1790_s9 = smov [#allocation3]   ;;  %s2040_s0 = inlined_call_operand.vmem [shape: f32[2,8,4], index: 0, kind: input, shape index: {}]   ;;  %s2041_s1 = inlined_call_operand.hbm [shape: f32[160,256], index: 1, kind: input, shape index: {}]   ;;  %s2042_s2 = inlined_call_operand.vmem [shape: f32[2,1], index: 2, kind: output, shape index: {}]  }
   0x1   :  { %s15_s10 = sshll.u32 %s1790_s9, 4  ;;  %s1766_s13 = scalar_lea.hbm %s2041_s1, 5120  ;;  %s16_s10 = int_to_ptr.vmem [resolvable:$true] %s15_s10 }
   0x2   :  { %p1767_p0 = scmp.ne.s32.totalorder %s2041_s1, %s1766_s13  ;;  %p1770_p1 = scmp.lt.u32.totalorder %s1766_s13, %s2041_s1 }
   0x4   :  { %p1772_p2 = pnand %p1770_p1, %p1767_p0 }
   0x6   :  { %1775 = shalt.err (!%p1772_p2)
}
   0x7   :  { %s1776_s18 = scalar_lea.vmem %s16_s10, 5120  ;;  %p1781_p4 = scmp.lt.s32.totalorder %s16_s10, %s16_s10 }
   0x8   :  { %p1777_p3 = scmp.ne.s32.totalorder %s16_s10, %s1776_s18  ;;  %p1782_p5 = scmp.lt.s32.totalorder %s1776_s18, %s1776_s18 }
   0xa   :  { %p1783_p6 = por %p1782_p5, %p1781_p4 }
   0xc   :  { %p1784_p7 = pnand %p1783_p6, %p1777_p3 }
   0xe   :  { %1787 = shalt.err (!%p1784_p7)
}
   0xf   :  { %s1791_s19 = smov 256   ;;  %s1792_s20 = smov 16  }
  0x10   :  { %21 = dma.hbm_to_vmem [thread:$0]  %s2041_s1, 5120, %s16_s10, [#allocation4], %s1791_s19, %s1791_s19, %s1792_s20  }
  0x11   :  { %1788 = dma.done.wait [#allocation4], 5120  }
  0x12   :  { %1789 = vsyncadd [#allocation4], 4294962176  ;;  %v1793_v0 = vmov 0.0   ;;  %v26_v1 = vld [vmem:[#allocation3 + $0x8] sm:$0xff]  ;;  %v28_v2 = vld [vmem:[#allocation3 + $0x18] sm:$0xff]  ;;  %vm111_vm0 = vcmask 1043456   ;;  %v94_v35 = vlaneseq }
  0x13   :  { %182 = vmatprep.mubr.f32.mxu0 %v1793_v0  ;;  %265 = vmatprep.mubr.f32.mxu1 %v1793_v0  ;;  %v25_v3 = vld [vmem:[#allocation3] sm:$0xff]  ;;  %v1827_v4 = vpack.c.bf16 %v28_v2, %v26_v1  ;;  %v27_v5 = vld [vmem:[#allocation3 + $0x10] sm:$0xff]  ;;  %v30_v6 = vld [vmem:[#allocation3 + $0x28] sm:$0xff]  ;;  %vm50_vm1 = vcmask 1041409   ;;  %vm53_vm2 = vcmask 25600   ;;  %vm55_vm3 = vcmask 1042434  }
  0x14   :  { %v32_v7 = vld [vmem:[#allocation3 + $0x38] sm:$0xff]  ;;  %v1829_v8 = vpack.c.bf16 %v27_v5, %v25_v3  ;;  %v29_v10 = vld [vmem:[#allocation3 + $0x20] sm:$0xff]  ;;  %v31_v11 = vld [vmem:[#allocation3 + $0x30] sm:$0xff]  ;;  %vm60_vm4 = vcmask 1043459   ;;  %vm65_vm5 = vcmask 1044484   ;;  %vm58_vm6 = vcmask 26625  }
  0x15   :  { %v1831_v9 = vpack.c.bf16 %v32_v7, %v30_v6  ;;  %v34_v12 = vld [vmem:[#allocation3 + $0x48] sm:$0xff]  ;;  %1498 = vmatprep.subr.bf16.mxu1 %v1827_v4  ;;  %v36_v13 = vld [vmem:[#allocation3 + $0x58] sm:$0xff]  ;;  %v33_v14 = vld [vmem:[#allocation3 + $0x40] sm:$0xff]  ;;  %v1835_v15 = vpack.c.bf16 %v31_v11, %v29_v10  ;;  %vm63_vm7 = vcmask 27650   ;;  %vm68_vm8 = vcmask 28675   ;;  %s1797_s26 = smov 96  }
  0x16   :  { %1500 = vmatpush1.bf16.msra.mxu1 %v1829_v8  ;;  %v35_v16 = vld [vmem:[#allocation3 + $0x50] sm:$0xff]  ;;  %v42_v17 = vld [vmem:[#allocation3 + $0x88] sm:$0xf]  ;;  %v41_v18 = vld [vmem:[#allocation3 + $0x80] sm:$0xf]  ;;  %v1838_v19 = vpack.c.bf16 %v36_v13, %v34_v12  ;;  %vm104_vm9 = vcmask 31744  }
  0x17   :  { %1502 = vmatprep.subr.bf16.mxu1 %v1831_v9  ;;  %1431 = vmatprep.subr.msk.mxu0 %vm111_vm0, %v42_v17  ;;  %v1844_v20 = vld [vmem:[%s2040_s0] sm:$0xff]  ;;  %v46_v21 = vld [vmem:[%s2040_s0 + $0x8] sm:$0xff]  ;;  %v38_v22 = vld [vmem:[#allocation3 + $0x68] sm:$0xff]  ;;  %v1852_v25 = vpack.c.bf16 %v35_v16, %v33_v14  ;;  %v95_v36 = vshrl.u32 %v94_v35, 7  ;;  %s1794_s0 = smov 64   ;;  %vm70_vm10 = vcmask 1045509  }
  0x18   :  { %1432 = vmatpush1.msk.msra.mxu0 %vm111_vm0, %v41_v18  ;;  %v40_v23 = vld [vmem:[#allocation3 + $0x78] sm:$0xff]  ;;  %v1850_v24 = vrot.slane %v46_v21, 7  ;;  %v37_v31 = vld [vmem:[#allocation3 + $0x60] sm:$0xff]  ;;  %v39_v32 = vld [vmem:[#allocation3 + $0x70] sm:$0xff]  ;;  %vm75_vm11 = vcmask 1046534   ;;  %vm80_vm12 = vcmask 1047559  }
  0x19   :  { %1514 = vmatprep.subr.bf16.mxu0 %v1827_v4  ;;  %v1866_v30 = vpack.c.bf16 %v40_v23, %v38_v22  ;;  %v1870_v33 = vpack.c.bf16 %v39_v32, %v37_v31  ;;  %v96_v37 = vsub.s32 0, %v95_v36  ;;  %v44_v38 = vld [vmem:[#allocation3 + $0x90] ss:$8 sm:$0x3]  ;;  %v100_v44 = vsub.s32 1, %v95_v36 }
  0x1a   :  { %1504 = vmatpush1.bf16.msra.mxu1 %v1835_v15  ;;  %v51_v26 = vsel %vm50_vm1, %v1850_v24, %v1844_v20  ;;  %v56_v27 = vsel %vm55_vm3, %v1850_v24, %v1844_v20  ;;  %v61_v28 = vsel %vm60_vm4, %v1850_v24, %v1844_v20  ;;  %v66_v29 = vsel %vm65_vm5, %v1850_v24, %v1844_v20 }
  0x1b   :  { %1506 = vmatprep.subr.bf16.mxu1 %v1838_v19  ;;  %54 = vst.msk [vmem:[#allocation2] sm:$0x3] %vm53_vm2, %v51_v26  ;;  %v1895_v39 = vrot.slane %v44_v38, %v96_v37  ;;  %v1901_v48 = vrot.slane %v44_v38, %v100_v44  ;;  %v71_v57 = vsel %vm70_vm10, %v1850_v24, %v1844_v20  ;;  %vm73_vm13 = vcmask 29700  }
  0x1c   :  { %59 = vst.msk [vmem:[#allocation2 + $0x1] sm:$0x6] %vm58_vm6, %v56_v27  ;;  %v76_v58 = vsel %vm75_vm11, %v1850_v24, %v1844_v20  ;;  %vm78_vm14 = vcmask 30725   ;;  %v81_v59 = vsel %vm80_vm12, %v1850_v24, %v1844_v20  ;;  %vm83_vm15 = vcmask 31750  }
  0x1d   :  { %64 = vst.msk [vmem:[#allocation2 + $0x2] sm:$0xc] %vm63_vm7, %v61_v28  ;;  %vm87_vm0 = vcmask 31751   ;;  %vm89_vm1 = vcmask 24576   ;;  %v1920_v7 = vand.u32 127, %v94_v35  ;;  %vm197_vm3 = vcmask 523264  }
  0x1e   :  { %69 = vst.msk [vmem:[#allocation2 + $0x3] sm:$0x18] %vm68_vm8, %v66_v29  ;;  %1508 = vmatpush1.bf16.msra.mxu1 %v1852_v25  ;;  %vm1796_vm4 = vmmov 0   ;;  %vm1196_vm8 = vcmask 261120   ;;  %vm1350_vm10 = vcmask 64512   ;;  %vm1424_vm11 = vcmask 1024  }
  0x1f   :  { %1510 = vmatprep.subr.bf16.mxu1 %v1866_v30  ;;  %74 = vst.msk [vmem:[#allocation2 + $0x4] sm:$0x30] %vm73_vm13, %v71_v57  ;;  %vm297_vm2 = vcmp.lt.s32.totalorder %v1920_v7, 32  ;;  %vm1178_vm5 = vcmp.ge.s32.totalorder %v1920_v7, 32  ;;  %vm1179_vm6 = vcmp.lt.s32.totalorder %v1920_v7, 64 }
  0x20   :  { %79 = vst.msk [vmem:[#allocation2 + $0x5] sm:$0x60] %vm78_vm14, %v76_v58  ;;  %vm1180_vm7 = vmand %vm1178_vm5, %vm1179_vm6 }
  0x21   :  { %84 = vst.msk [vmem:[#allocation2 + $0x6] sm:$0xc0] %vm83_vm15, %v81_v59 }
  0x22   :  { %1512 = vmatpush1.bf16.msra.mxu1 %v1870_v33  ;;  %88 = vst.msk [vmem:[#allocation2 + $0x7] sm:$0x80] %vm87_vm0, %v1844_v20 }
  0x23   :  { %1530 = vmatprep.subr.bf16.mxu1 %v1827_v4  ;;  %90 = vst.msk [vmem:[#allocation2 + $0xf] sm:$0x1] %vm89_vm1, %v1850_v24 }
  0x25   :  { %v91_v34 = vld [vmem:[#allocation2] sm:$0xff]  ;;  %266 = vmatmul.mubr.f32.vlgmr.msra.gmra.mrb[0].mxu1 %v1793_v0 }
  0x26   :  { %1433 = vmatmul.mubr.msk.f32.vlgmr.msra.gmra.mrb[0].mxu0 %vm104_vm9, %v91_v34  ;;  %1532 = vmatpush1.bf16.msra.mxu1 %v1829_v8 }
  0x27   :  { %1516 = vmatpush1.bf16.msra.mxu0 %v1829_v8  ;;  %188 = vmatprep.mubr.f32.mxu0 %v1793_v0 }
  0x28   :  { %1518 = vmatprep.subr.bf16.mxu0 %v1831_v9  ;;  %488 = vmatprep.mubr.f32.mxu1 %v1793_v0 }
  0x29   :  { %1534 = vmatprep.subr.bf16.mxu1 %v1831_v9 }
  0x2a   :  { %1536 = vmatpush1.bf16.msra.mxu1 %v1835_v15  ;;  %v92_v1 = vld [vmem:[#allocation2 + $0x8] sm:$0xff] }
  0x2b   :  { %1520 = vmatpush1.bf16.msra.mxu0 %v1835_v15  ;;  %1538 = vmatprep.subr.bf16.mxu1 %v1838_v19 }
  0x2c   :  { %1522 = vmatprep.subr.bf16.mxu0 %v1838_v19  ;;  %1434 = vmatmul.mubr.msk.f32.gmra.mrb[2].mxu0 %vm104_vm9, %v92_v1  ;;  %vm1273_vm9 = vcmask 130048  }
  0x2d   :  { %376 = vmatprep.mubr.f32.mxu0 %v1793_v0 }
  0x2e   :  { %1540 = vmatpush1.bf16.msra.mxu1 %v1852_v25 }
  0x2f   :  { %1524 = vmatpush1.bf16.msra.mxu0 %v1852_v25  ;;  %1542 = vmatprep.subr.bf16.mxu1 %v1866_v30 }
  0x30   :  { %1526 = vmatprep.subr.bf16.mxu0 %v1866_v30 }
  0x32   :  { %1544 = vmatpush1.bf16.msra.mxu1 %v1870_v33 }
  0x33   :  { %1528 = vmatpush1.bf16.msra.mxu0 %v1870_v33  ;;  %1562 = vmatprep.subr.bf16.mxu1 %v1827_v4 }
  0x34   :  { %1546 = vmatprep.subr.bf16.mxu0 %v1827_v4 }
  0xf8   :  { %v267_v43 = vpop.f32.mrb[0].mxu1 }
  0xf9   :  { %v184_v40 = vpop.f32.mrb[0].mxu0  ;;  %v269_v46 = vpop.f32.mrb[1].mxu1 }
  0xfa   :  { %v1898_v41 = vadd.f32 %v184_v40, %v1895_v39  ;;  %v186_v42 = vpop.f32.mrb[1].mxu0 }
  0xfb   :  { %v1904_v49 = vadd.f32 %v186_v42, %v1901_v48 }
  0xfc   :  { %v272_v45 = vadd.f32 %v267_v43, %v1898_v41 }
  0xfd   :  { %v273_v50 = vadd.f32 %v269_v46, %v1904_v49 }
  0xfe   :  { %v1435_v47 = vmul.f32 -1.442695, %v272_v45 }
  0xff   :  { %v1436_v56 = vmul.f32 -1.442695, %v273_v50  ;;  %v1934_v16 = vpop.f32.mrb[2].mxu0 }
 0x100   :  { %1658 = vpow2.f32 %v1435_v47  ;;  %v1936_v17 = vpop.f32.mrb[3].mxu0 }
 0x101   :  { %1660 = vtanh.f32 %v273_v50 }
 0x10a   :  { %v1659_v51 = vpop.eup %1658 }
 0x10b   :  { %v280_v52 = vadd.f32 1.0, %v1659_v51  ;;  %v1661_v53 = vpop.eup %1660 }
 0x10d   :  { %1662 = vrcp.f32 %v280_v52 }
 0x10e   :  { %1664 = vpow2.f32 %v1436_v56 }
 0x117   :  { %v1663_v54 = vpop.eup %1662 }
 0x118   :  { %v288_v55 = vmul.f32 %v1663_v54, %v1661_v53  ;;  %v1665_v60 = vpop.eup %1664  ;;  %v287_v62 = vmul.f32 0.0, %v1663_v54 }
 0x119   :  { %v281_v61 = vadd.f32 1.0, %v1665_v60 }
 0x11a   :  { %290 = vrot.lane.b32.xlu0 %v288_v55, %s1794_s0 }
 0x11b   :  { %1666 = vrcp.f32 %v281_v61 }
 0x125   :  { %v1667_v3 = vpop.eup %1666 }
 0x18c   :  { %v291_v63 = vpop.permute.xlu0 %290 }
 0x18d   :  { %v293_v2 = vadd.f32 %v291_v63, %v287_v62 }
 0x18f   :  { %1668 = vtanh.f32 %v293_v2  ;;  %300 = vrot.lane.b32.xlu1 %v293_v2, %s1794_s0 }
 0x199   :  { %v1669_v5 = vpop.eup %1668 }
 0x19a   :  { %v295_v6 = vmul.f32 %v1669_v5, %v1667_v3 }
 0x19c   :  { %305 = vrot.lane.b32.xlu0 %v295_v6, %s1794_s0 }
 0x201   :  { %v301_v10 = vpop.permute.xlu1 %300 }
 0x202   :  { %v303_v11 = vsel %vm297_vm2, %v301_v10, 0.0 }
 0x203   :  { %v405_v12 = vrot.slane %v303_v11, 6 }
 0x205   :  { %406 = vrot.lane.b32.xlu1 %v405_v12, %s1794_s0 }
 0x20e   :  { %v306_v13 = vpop.permute.xlu0 %305 }
 0x20f   :  { %v308_v14 = vsel %vm297_vm2, %v306_v13, 0.0 }
 0x210   :  { %1437 = vmatmul.mubr.msk.f32.vlgmr.msra.gmra.mrb[4].mxu0 %vm197_vm3, %v308_v14 }
 0x211   :  { %1548 = vmatpush1.bf16.msra.mxu0 %v1829_v8  ;;  %598 = vmatprep.mubr.f32.mxu0 %v1793_v0 }
 0x212   :  { %1550 = vmatprep.subr.bf16.mxu0 %v1831_v9 }
 0x215   :  { %1552 = vmatpush1.bf16.msra.mxu0 %v1835_v15 }
 0x216   :  { %1554 = vmatprep.subr.bf16.mxu0 %v1838_v19 }
 0x219   :  { %1556 = vmatpush1.bf16.msra.mxu0 %v1852_v25 }
 0x21a   :  { %1558 = vmatprep.subr.bf16.mxu0 %v1866_v30 }
 0x21d   :  { %1560 = vmatpush1.bf16.msra.mxu0 %v1870_v33 }
 0x21e   :  { %1578 = vmatprep.subr.bf16.mxu0 %v1827_v4 }
 0x277   :  { %v407_v36 = vpop.permute.xlu1 %406 }
 0x2e3   :  { %v378_v18 = vpop.f32.mrb[4].mxu0 }
 0x2e4   :  { %v385_v20 = vrot.slane %v378_v18, 6  ;;  %v380_v21 = vpop.f32.mrb[5].mxu0 }
 0x2e5   :  { %v386_v24 = vrot.slane %v380_v21, 6 }
 0x2e6   :  { %v389_v22 = vadd.f32 %v385_v20, %v1898_v41 }
 0x2e7   :  { %v390_v26 = vadd.f32 %v386_v24, %v1904_v49 }
 0x2e8   :  { %v1438_v23 = vmul.f32 -1.442695, %v389_v22 }
 0x2e9   :  { %v1439_v34 = vmul.f32 -1.442695, %v390_v26 }
 0x2ea   :  { %1670 = vpow2.f32 %v1438_v23 }
 0x2eb   :  { %1672 = vtanh.f32 %v390_v26 }
 0x2f4   :  { %v1671_v27 = vpop.eup %1670 }
 0x2f5   :  { %v397_v28 = vadd.f32 1.0, %v1671_v27  ;;  %v1673_v29 = vpop.eup %1672 }
 0x2f7   :  { %1674 = vrcp.f32 %v397_v28 }
 0x2f8   :  { %1676 = vpow2.f32 %v1439_v34 }
 0x301   :  { %v1675_v31 = vpop.eup %1674 }
 0x302   :  { %v410_v32 = vmul.f32 %v1675_v31, %v1673_v29  ;;  %v1677_v35 = vpop.eup %1676  ;;  %v409_v38 = vmul.f32 %v1675_v31, %v407_v36 }
 0x303   :  { %v398_v37 = vadd.f32 1.0, %v1677_v35 }
 0x304   :  { %412 = vrot.lane.b32.xlu0 %v410_v32, %s1794_s0 }
 0x305   :  { %1678 = vrcp.f32 %v398_v37 }
 0x30f   :  { %v1679_v43 = vpop.eup %1678 }
 0x376   :  { %v413_v40 = vpop.permute.xlu0 %412 }
 0x377   :  { %v415_v42 = vadd.f32 %v413_v40, %v409_v38 }
 0x379   :  { %1680 = vtanh.f32 %v415_v42  ;;  %v517_v60 = vrot.slane %v415_v42, 6 }
 0x383   :  { %v1681_v44 = vpop.eup %1680 }
 0x384   :  { %v417_v45 = vmul.f32 %v1681_v44, %v1679_v43 }
 0x386   :  { %v419_v46 = vrot.slane %v417_v45, 2 }
 0x388   :  { %420 = vrot.lane.b32.xlu1 %v419_v46, %s1794_s0  ;;  %v1982_v46 = vadd.f32 %v1934_v16, %v1895_v39 }
 0x3fa   :  { %v421_v47 = vpop.permute.xlu1 %420 }
 0x3fb   :  { %1440 = vmatmul.mubr.msk.f32.vlgmr.msra.gmra.mrb[2].mxu1 %vm197_vm3, %v421_v47 }
 0x3fc   :  { %1564 = vmatpush1.bf16.msra.mxu1 %v1829_v8  ;;  %708 = vmatprep.mubr.f32.mxu1 %v1793_v0 }
 0x3fd   :  { %1566 = vmatprep.subr.bf16.mxu1 %v1831_v9 }
 0x400   :  { %1568 = vmatpush1.bf16.msra.mxu1 %v1835_v15 }
 0x401   :  { %1570 = vmatprep.subr.bf16.mxu1 %v1838_v19 }
 0x404   :  { %1572 = vmatpush1.bf16.msra.mxu1 %v1852_v25 }
 0x405   :  { %1574 = vmatprep.subr.bf16.mxu1 %v1866_v30 }
 0x408   :  { %1576 = vmatpush1.bf16.msra.mxu1 %v1870_v33 }
 0x409   :  { %1594 = vmatprep.subr.bf16.mxu1 %v1827_v4 }
 0x4ce   :  { %v490_v50 = vpop.f32.mrb[2].mxu1 }
 0x4cf   :  { %v497_v51 = vrot.slane %v490_v50, 4  ;;  %v492_v52 = vpop.f32.mrb[3].mxu1 }
 0x4d0   :  { %v498_v55 = vrot.slane %v492_v52, 4 }
 0x4d1   :  { %v501_v53 = vadd.f32 %v497_v51, %v1898_v41 }
 0x4d2   :  { %v502_v56 = vadd.f32 %v498_v55, %v1904_v49 }
 0x4d3   :  { %v1441_v54 = vmul.f32 -1.442695, %v501_v53  ;;  %v1987_v53 = vadd.f32 %v1936_v17, %v1901_v48 }
 0x4d4   :  { %v1442_v1 = vmul.f32 -1.442695, %v502_v56 }
 0x4d5   :  { %1682 = vpow2.f32 %v1441_v54 }
 0x4d6   :  { %1684 = vtanh.f32 %v502_v56 }
 0x4df   :  { %v1683_v57 = vpop.eup %1682 }
 0x4e0   :  { %v509_v58 = vadd.f32 1.0, %v1683_v57  ;;  %v1685_v59 = vpop.eup %1684 }
 0x4e2   :  { %1686 = vrcp.f32 %v509_v58 }
 0x4e3   :  { %1688 = vpow2.f32 %v1442_v1 }
 0x4ec   :  { %v1687_v61 = vpop.eup %1686 }
 0x4ed   :  { %v520_v62 = vmul.f32 %v1687_v61, %v1685_v59  ;;  %v519_v63 = vmul.f32 %v1687_v61, %v517_v60  ;;  %v1689_v2 = vpop.eup %1688 }
 0x4ee   :  { %v510_v3 = vadd.f32 1.0, %v1689_v2 }
 0x4ef   :  { %522 = vrot.lane.b32.xlu0 %v520_v62, %s1794_s0 }
 0x4f0   :  { %1690 = vrcp.f32 %v510_v3 }
 0x4fa   :  { %v1691_v10 = vpop.eup %1690 }
 0x561   :  { %v523_v5 = vpop.permute.xlu0 %522 }
 0x562   :  { %v525_v6 = vadd.f32 %v523_v5, %v519_v63 }
 0x564   :  { %1692 = vtanh.f32 %v525_v6  ;;  %v627_v31 = vrot.slane %v525_v6, 6 }
 0x56e   :  { %v1693_v11 = vpop.eup %1692 }
 0x56f   :  { %v527_v12 = vmul.f32 %v1693_v11, %v1691_v10 }
 0x571   :  { %v529_v13 = vrot.slane %v527_v12, 4 }
 0x573   :  { %530 = vrot.lane.b32.xlu1 %v529_v13, %s1794_s0 }
 0x5e5   :  { %v531_v14 = vpop.permute.xlu1 %530 }
 0x5e6   :  { %1443 = vmatmul.mubr.msk.f32.vlgmr.msra.gmra.mrb[6].mxu0 %vm197_vm3, %v531_v14 }
 0x5e7   :  { %1580 = vmatpush1.bf16.msra.mxu0 %v1829_v8  ;;  %811 = vmatprep.mubr.f32.mxu0 %v1793_v0 }
 0x5e8   :  { %1582 = vmatprep.subr.bf16.mxu0 %v1831_v9 }
 0x5eb   :  { %1584 = vmatpush1.bf16.msra.mxu0 %v1835_v15 }
 0x5ec   :  { %1586 = vmatprep.subr.bf16.mxu0 %v1838_v19 }
 0x5ef   :  { %1588 = vmatpush1.bf16.msra.mxu0 %v1852_v25 }
 0x5f0   :  { %1590 = vmatprep.subr.bf16.mxu0 %v1866_v30 }
 0x5f3   :  { %1592 = vmatpush1.bf16.msra.mxu0 %v1870_v33 }
 0x5f4   :  { %1610 = vmatprep.subr.bf16.mxu0 %v1827_v4 }
 0x6b9   :  { %v600_v18 = vpop.f32.mrb[6].mxu0 }
 0x6ba   :  { %v607_v20 = vrot.slane %v600_v18, 2  ;;  %v602_v21 = vpop.f32.mrb[7].mxu0 }
 0x6bb   :  { %v608_v24 = vrot.slane %v602_v21, 2 }
 0x6bc   :  { %v611_v22 = vadd.f32 %v607_v20, %v1898_v41 }
 0x6bd   :  { %v612_v26 = vadd.f32 %v608_v24, %v1904_v49 }
 0x6be   :  { %v1444_v23 = vmul.f32 -1.442695, %v611_v22 }
 0x6bf   :  { %v1445_v36 = vmul.f32 -1.442695, %v612_v26 }
 0x6c0   :  { %1694 = vpow2.f32 %v1444_v23 }
 0x6c1   :  { %1696 = vtanh.f32 %v612_v26 }
 0x6ca   :  { %v1695_v27 = vpop.eup %1694 }
 0x6cb   :  { %v619_v28 = vadd.f32 1.0, %v1695_v27  ;;  %v1697_v29 = vpop.eup %1696 }
 0x6cd   :  { %1698 = vrcp.f32 %v619_v28 }
 0x6ce   :  { %1700 = vpow2.f32 %v1445_v36 }
 0x6d7   :  { %v1699_v32 = vpop.eup %1698 }
 0x6d8   :  { %v630_v34 = vmul.f32 %v1699_v32, %v1697_v29  ;;  %v629_v35 = vmul.f32 %v1699_v32, %v627_v31  ;;  %v1701_v37 = vpop.eup %1700 }
 0x6d9   :  { %v620_v41 = vadd.f32 1.0, %v1701_v37 }
 0x6da   :  { %632 = vrot.lane.b32.xlu0 %v630_v34, %s1794_s0 }
 0x6db   :  { %1702 = vrcp.f32 %v620_v41 }
 0x6e5   :  { %v1703_v49 = vpop.eup %1702 }
 0x74c   :  { %v633_v38 = vpop.permute.xlu0 %632 }
 0x74d   :  { %v635_v40 = vadd.f32 %v633_v38, %v629_v35 }
 0x74f   :  { %1704 = vtanh.f32 %v635_v40  ;;  %v731_v57 = vrot.slane %v635_v40, 6 }
 0x759   :  { %v1705_v42 = vpop.eup %1704 }
 0x75a   :  { %v637_v43 = vmul.f32 %v1705_v42, %v1703_v49 }
 0x75c   :  { %v639_v44 = vrot.slane %v637_v43, 6 }
 0x75e   :  { %640 = vrot.lane.b32.xlu1 %v639_v44, %s1794_s0 }
 0x7d0   :  { %v641_v45 = vpop.permute.xlu1 %640 }
 0x7d1   :  { %1446 = vmatmul.mubr.msk.f32.vlgmr.msra.gmra.mrb[4].mxu1 %vm197_vm3, %v641_v45 }
 0x7d2   :  { %1596 = vmatpush1.bf16.msra.mxu1 %v1829_v8  ;;  %921 = vmatprep.mubr.f32.mxu1 %v1793_v0 }
 0x7d3   :  { %1598 = vmatprep.subr.bf16.mxu1 %v1831_v9 }
 0x7d6   :  { %1600 = vmatpush1.bf16.msra.mxu1 %v1835_v15 }
 0x7d7   :  { %1602 = vmatprep.subr.bf16.mxu1 %v1838_v19 }
 0x7da   :  { %1604 = vmatpush1.bf16.msra.mxu1 %v1852_v25 }
 0x7db   :  { %1606 = vmatprep.subr.bf16.mxu1 %v1866_v30 }
 0x7de   :  { %1608 = vmatpush1.bf16.msra.mxu1 %v1870_v33 }
 0x7df   :  { %1626 = vmatprep.subr.bf16.mxu1 %v1827_v4 }
 0x8a4   :  { %v710_v47 = vpop.f32.mrb[4].mxu1 }
 0x8a5   :  { %v715_v50 = vadd.f32 %v710_v47, %v1982_v46  ;;  %v712_v51 = vpop.f32.mrb[5].mxu1 }
 0x8a6   :  { %v716_v54 = vadd.f32 %v712_v51, %v1987_v53 }
 0x8a7   :  { %v1447_v52 = vmul.f32 -1.442695, %v715_v50 }
 0x8a8   :  { %v1448_v59 = vmul.f32 -1.442695, %v716_v54 }
 0x8a9   :  { %1706 = vpow2.f32 %v1447_v52 }
 0x8aa   :  { %1708 = vtanh.f32 %v716_v54 }
 0x8b3   :  { %v1707_v55 = vpop.eup %1706 }
 0x8b4   :  { %v723_v56 = vadd.f32 1.0, %v1707_v55  ;;  %v1709_v4 = vpop.eup %1708 }
 0x8b6   :  { %1710 = vrcp.f32 %v723_v56 }
 0x8b7   :  { %1712 = vpow2.f32 %v1448_v59 }
 0x8c0   :  { %v1711_v39 = vpop.eup %1710 }
 0x8c1   :  { %v734_v16 = vmul.f32 %v1711_v39, %v1709_v4  ;;  %v733_v58 = vmul.f32 %v1711_v39, %v731_v57  ;;  %v1713_v60 = vpop.eup %1712 }
 0x8c2   :  { %v724_v61 = vadd.f32 1.0, %v1713_v60 }
 0x8c3   :  { %736 = vrot.lane.b32.xlu0 %v734_v16, %s1794_s0 }
 0x8c4   :  { %1714 = vrcp.f32 %v724_v61 }
 0x8ce   :  { %v1715_v17 = vpop.eup %1714 }
 0x935   :  { %v737_v62 = vpop.permute.xlu0 %736 }
 0x936   :  { %v739_v48 = vadd.f32 %v737_v62, %v733_v58 }
 0x938   :  { %1716 = vtanh.f32 %v739_v48  ;;  %v840_v21 = vrot.slane %v739_v48, 6 }
 0x942   :  { %v1717_v63 = vpop.eup %1716 }
 0x943   :  { %v741_v1 = vmul.f32 %v1717_v63, %v1715_v17 }
 0x945   :  { %743 = vrot.lane.b32.xlu1 %v741_v1, %s1794_s0 }
 0x9b7   :  { %v744_v2 = vpop.permute.xlu1 %743 }
 0x9b8   :  { %1449 = vmatmul.mubr.msk.f32.vlgmr.msra.gmra.mrb[8].mxu0 %vm197_vm3, %v744_v2 }
 0x9b9   :  { %1612 = vmatpush1.bf16.msra.mxu0 %v1829_v8  ;;  %1031 = vmatprep.mubr.f32.mxu0 %v1793_v0 }
 0x9ba   :  { %1614 = vmatprep.subr.bf16.mxu0 %v1831_v9 }
 0x9bd   :  { %1616 = vmatpush1.bf16.msra.mxu0 %v1835_v15 }
 0x9be   :  { %1618 = vmatprep.subr.bf16.mxu0 %v1838_v19 }
 0x9c1   :  { %1620 = vmatpush1.bf16.msra.mxu0 %v1852_v25 }
 0x9c2   :  { %1622 = vmatprep.subr.bf16.mxu0 %v1866_v30 }
 0x9c5   :  { %1624 = vmatpush1.bf16.msra.mxu0 %v1870_v33 }
 0xa8b   :  { %v813_v3 = vpop.f32.mrb[8].mxu0 }
 0xa8c   :  { %v820_v5 = vrot.slane %v813_v3, 6  ;;  %v815_v6 = vpop.f32.mrb[9].mxu0 }
 0xa8d   :  { %v821_v12 = vrot.slane %v815_v6, 6 }
 0xa8e   :  { %v824_v10 = vadd.f32 %v820_v5, %v1982_v46 }
 0xa8f   :  { %v825_v13 = vadd.f32 %v821_v12, %v1987_v53 }
 0xa90   :  { %v1450_v11 = vmul.f32 -1.442695, %v824_v10 }
 0xa91   :  { %v1451_v26 = vmul.f32 -1.442695, %v825_v13 }
 0xa92   :  { %1718 = vpow2.f32 %v1450_v11 }
 0xa93   :  { %1720 = vtanh.f32 %v825_v13 }
 0xa9c   :  { %v1719_v14 = vpop.eup %1718 }
 0xa9d   :  { %v832_v18 = vadd.f32 1.0, %v1719_v14  ;;  %v1721_v20 = vpop.eup %1720 }
 0xa9f   :  { %1722 = vrcp.f32 %v832_v18 }
 0xaa0   :  { %1724 = vpow2.f32 %v1451_v26 }
 0xaa9   :  { %v1723_v22 = vpop.eup %1722 }
 0xaaa   :  { %v843_v23 = vmul.f32 %v1723_v22, %v1721_v20  ;;  %v842_v24 = vmul.f32 %v1723_v22, %v840_v21  ;;  %v1725_v27 = vpop.eup %1724 }
 0xaab   :  { %v833_v28 = vadd.f32 1.0, %v1725_v27 }
 0xaac   :  { %845 = vrot.lane.b32.xlu0 %v843_v23, %s1794_s0 }
 0xaad   :  { %1726 = vrcp.f32 %v833_v28 }
 0xab7   :  { %v1727_v32 = vpop.eup %1726 }
 0xb1e   :  { %v846_v29 = vpop.permute.xlu0 %845 }
 0xb1f   :  { %v848_v31 = vadd.f32 %v846_v29, %v842_v24 }
 0xb21   :  { %1728 = vtanh.f32 %v848_v31 }
 0xb2b   :  { %v1729_v34 = vpop.eup %1728 }
 0xb2c   :  { %v850_v35 = vmul.f32 %v1729_v34, %v1727_v32 }
 0xb2e   :  { %v852_v36 = vrot.slane %v850_v35, 2 }
 0xb30   :  { %853 = vrot.lane.b32.xlu1 %v852_v36, %s1794_s0 }
 0xba2   :  { %v854_v37 = vpop.permute.xlu1 %853 }
 0xba3   :  { %1452 = vmatmul.mubr.msk.f32.vlgmr.msra.gmra.mrb[6].mxu1 %vm197_vm3, %v854_v37 }
 0xba4   :  { %1628 = vmatpush1.bf16.msra.mxu1 %v1829_v8  ;;  %1141 = vmatprep.mubr.f32.mxu1 %v1793_v0 }
 0xba5   :  { %1630 = vmatprep.subr.bf16.mxu1 %v1831_v9 }
 0xba8   :  { %1632 = vmatpush1.bf16.msra.mxu1 %v1835_v15 }
 0xba9   :  { %1634 = vmatprep.subr.bf16.mxu1 %v1838_v19 }
 0xbac   :  { %1636 = vmatpush1.bf16.msra.mxu1 %v1852_v25  ;;  %v950_v25 = vrot.slane %v848_v31, 6 }
 0xbad   :  { %1638 = vmatprep.subr.bf16.mxu1 %v1866_v30 }
 0xbb0   :  { %1640 = vmatpush1.bf16.msra.mxu1 %v1870_v33 }
 0xc76   :  { %v923_v41 = vpop.f32.mrb[6].mxu1 }
 0xc77   :  { %v930_v38 = vrot.slane %v923_v41, 4  ;;  %v925_v40 = vpop.f32.mrb[7].mxu1 }
 0xc78   :  { %v931_v42 = vrot.slane %v925_v40, 4 }
 0xc79   :  { %v934_v49 = vadd.f32 %v930_v38, %v1982_v46 }
 0xc7a   :  { %v935_v9 = vadd.f32 %v931_v42, %v1987_v53  ;;  %v1188_v42 = vld [vmem:[#allocation3 + $0xa0] sm:$0xff] }
 0xc7b   :  { %v1453_v8 = vmul.f32 -1.442695, %v934_v49 }
 0xc7c   :  { %v1454_v33 = vmul.f32 -1.442695, %v935_v9 }
 0xc7d   :  { %1730 = vpow2.f32 %v1453_v8 }
 0xc7e   :  { %1732 = vtanh.f32 %v935_v9  ;;  %v1190_v9 = vld [vmem:[#allocation3 + $0xc0] sm:$0xff] }
 0xc87   :  { %v1731_v43 = vpop.eup %1730 }
 0xc88   :  { %v942_v15 = vadd.f32 1.0, %v1731_v43  ;;  %v1733_v19 = vpop.eup %1732  ;;  %v1795_v43 = vmov 0.0|0.0  }
 0xc89   :  { %1641 = vmatprep.subr.bf16.mxu0 %v1795_v43 }
 0xc8a   :  { %1734 = vrcp.f32 %v942_v15 }
 0xc8b   :  { %1736 = vpow2.f32 %v1454_v33 }
 0xc94   :  { %v1735_v44 = vpop.eup %1734 }
 0xc95   :  { %v953_v30 = vmul.f32 %v1735_v44, %v1733_v19  ;;  %v952_v45 = vmul.f32 %v1735_v44, %v950_v25  ;;  %v1737_v47 = vpop.eup %1736  ;;  %v1191_v19 = vld [vmem:[#allocation3 + $0xd0] sm:$0xff] }
 0xc96   :  { %v943_v50 = vadd.f32 1.0, %v1737_v47  ;;  %v1645_v25 = vpack.c.bf16 %v1191_v19, %v1190_v9 }
 0xc97   :  { %955 = vrot.lane.b32.xlu0 %v953_v30, %s1794_s0 }
 0xc98   :  { %1738 = vrcp.f32 %v943_v50 }
 0xca2   :  { %v1739_v54 = vpop.eup %1738 }
 0xd09   :  { %v956_v51 = vpop.permute.xlu0 %955 }
 0xd0a   :  { %v958_v52 = vadd.f32 %v956_v51, %v952_v45 }
 0xd0c   :  { %1740 = vtanh.f32 %v958_v52  ;;  %v1060_v1 = vrot.slane %v958_v52, 6  ;;  %v1270_v52 = vld [vmem:[#allocation3 + $0xf0] sm:$0xff] }
 0xd16   :  { %v1741_v55 = vpop.eup %1740 }
 0xd17   :  { %v960_v56 = vmul.f32 %v1741_v55, %v1739_v54  ;;  %v1271_v54 = vld [vmem:[#allocation3 + $0x100] sm:$0xff] }
 0xd18   :  { %v1648_v55 = vpack.c.bf16 %v1271_v54, %v1270_v52 }
 0xd19   :  { %v962_v4 = vrot.slane %v960_v56, 4  ;;  %v1192_v56 = vld [vmem:[#allocation3 + $0xe0] ss:$0 sm:$0xff] }
 0xd1b   :  { %963 = vrot.lane.b32.xlu1 %v962_v4, %s1794_s0 }
 0xd8d   :  { %v964_v57 = vpop.permute.xlu1 %963 }
 0xd8e   :  { %1455 = vmatmul.mubr.msk.f32.vlgmr.msra.gmra.mrb[10].mxu0 %vm197_vm3, %v964_v57 }
 0xd8f   :  { %1482 = vmatprep.mubr.msk.f32.mxu0 %vm1796_vm4, %v1793_v0 }
 0xe61   :  { %v1033_v39 = vpop.f32.mrb[10].mxu0 }
 0xe62   :  { %v1040_v16 = vrot.slane %v1033_v39, 2  ;;  %v1035_v58 = vpop.f32.mrb[11].mxu0 }
 0xe63   :  { %v1041_v61 = vrot.slane %v1035_v58, 2  ;;  %v1272_v58 = vld [vmem:[#allocation3 + $0x110] ss:$0 sm:$0xff] }
 0xe64   :  { %v1044_v59 = vadd.f32 %v1040_v16, %v1982_v46  ;;  %v1348_v16 = vld [vmem:[#allocation3 + $0x120] sm:$0xff] }
 0xe65   :  { %v1045_v62 = vadd.f32 %v1041_v61, %v1987_v53 }
 0xe66   :  { %v1456_v60 = vmul.f32 -1.442695, %v1044_v59 }
 0xe67   :  { %v1457_v6 = vmul.f32 -1.442695, %v1045_v62 }
 0xe68   :  { %1742 = vpow2.f32 %v1456_v60 }
 0xe69   :  { %1744 = vtanh.f32 %v1045_v62 }
 0xe72   :  { %v1743_v48 = vpop.eup %1742 }
 0xe73   :  { %v1052_v17 = vadd.f32 1.0, %v1743_v48  ;;  %v1745_v63 = vpop.eup %1744  ;;  %v1349_v48 = vld [vmem:[#allocation3 + $0x130] ss:$0 sm:$0xff] }
 0xe75   :  { %1746 = vrcp.f32 %v1052_v17 }
 0xe76   :  { %1748 = vpow2.f32 %v1457_v6 }
 0xe7f   :  { %v1747_v2 = vpop.eup %1746 }
 0xe80   :  { %v1063_v3 = vmul.f32 %v1747_v2, %v1745_v63  ;;  %v1062_v5 = vmul.f32 %v1747_v2, %v1060_v1  ;;  %v1749_v10 = vpop.eup %1748 }
 0xe81   :  { %v1053_v11 = vadd.f32 1.0, %v1749_v10 }
 0xe82   :  { %1065 = vrot.lane.b32.xlu0 %v1063_v3, %s1794_s0 }
 0xe83   :  { %1750 = vrcp.f32 %v1053_v11 }
 0xe8d   :  { %v1751_v14 = vpop.eup %1750 }
 0xef4   :  { %v1066_v12 = vpop.permute.xlu0 %1065 }
 0xef5   :  { %v1068_v13 = vadd.f32 %v1066_v12, %v1062_v5 }
 0xef7   :  { %1752 = vtanh.f32 %v1068_v13 }
 0xf01   :  { %v1753_v18 = vpop.eup %1752 }
 0xf02   :  { %v1070_v20 = vmul.f32 %v1753_v18, %v1751_v14 }
 0xf04   :  { %v1072_v21 = vrot.slane %v1070_v20, 6 }
 0xf06   :  { %1073 = vrot.lane.b32.xlu1 %v1072_v21, %s1794_s0 }
 0xf78   :  { %v1074_v22 = vpop.permute.xlu1 %1073 }
 0xf79   :  { %1458 = vmatmul.mubr.msk.f32.vlgmr.msra.gmra.mrb[8].mxu1 %vm197_vm3, %v1074_v22 }
0x104c   :  { %v1143_v23 = vpop.f32.mrb[8].mxu1 }
0x104d   :  { %v1150_v24 = vrot.slane %v1143_v23, 2  ;;  %v1145_v26 = vpop.f32.mrb[9].mxu1 }
0x104e   :  { %v1151_v29 = vrot.slane %v1145_v26, 2 }
0x104f   :  { %v1154_v27 = vadd.f32 %v1150_v24, %v1982_v46 }
0x1050   :  { %v1155_v31 = vadd.f32 %v1151_v29, %v1987_v53  ;;  %v1189_v53 = vld [vmem:[#allocation3 + $0xb0] sm:$0xff] }
0x1051   :  { %v1459_v28 = vmul.f32 -1.442695, %v1154_v27  ;;  %v1642_v15 = vpack.c.bf16 %v1189_v53, %v1188_v42 }
0x1052   :  { %v1460_v41 = vmul.f32 -1.442695, %v1155_v31 }
0x1053   :  { %1754 = vpow2.f32 %v1459_v28  ;;  %1643 = vmatpush3.bf16.msra.mxu0 %v1642_v15 }
0x1054   :  { %1756 = vtanh.f32 %v1155_v31  ;;  %1644 = vmatprep.subr.bf16.mxu0 %v1795_v43 }
0x1057   :  { %1646 = vmatpush3.bf16.msra.mxu0 %v1645_v25 }
0x1058   :  { %1647 = vmatprep.subr.bf16.mxu0 %v1795_v43 }
0x105d   :  { %v1755_v32 = vpop.eup %1754 }
0x105e   :  { %v1162_v34 = vadd.f32 1.0, %v1755_v32  ;;  %v1757_v35 = vpop.eup %1756 }
0x1060   :  { %1758 = vrcp.f32 %v1162_v34 }
0x1061   :  { %1760 = vpow2.f32 %v1460_v41 }
0x106a   :  { %v1759_v36 = vpop.eup %1758 }
0x106b   :  { %v1170_v37 = vmul.f32 %v1759_v36, %v1757_v35  ;;  %v1761_v38 = vpop.eup %1760  ;;  %v1169_v49 = vmul.f32 %v1759_v36, %v1068_v13 }
0x106c   :  { %v1163_v40 = vadd.f32 1.0, %v1761_v38 }
0x106d   :  { %1172 = vrot.lane.b32.xlu0 %v1170_v37, %s1794_s0 }
0x106e   :  { %1762 = vrcp.f32 %v1163_v40 }
0x1078   :  { %v1763_v44 = vpop.eup %1762 }
0x10df   :  { %v1173_v46 = vpop.permute.xlu0 %1172 }
0x10e0   :  { %v1175_v8 = vadd.f32 %v1173_v46, %v1169_v49 }
0x10e2   :  { %1764 = vtanh.f32 %v1175_v8 }
0x10ec   :  { %v1765_v30 = vpop.eup %1764 }
0x10ed   :  { %v1177_v45 = vmul.f32 %v1765_v30, %v1763_v44 }
0x10ef   :  { %v1182_v33 = vrot.slane %v1177_v45, 6 }
0x10f1   :  { %1183 = vrot.lane.b32.xlu1 %v1182_v33, %s1794_s0 }
0x1163   :  { %v1184_v47 = vpop.permute.xlu1 %1183 }
0x1164   :  { %v1187_v50 = vsel %vm1180_vm7, %v1184_v47, %v1074_v22 }
0x1165   :  { %1194 = vrot.lane.b32.xlu0 %v1187_v50, %s1797_s26 }
0x11d7   :  { %v1195_v51 = vpop.permute.xlu0 %1194 }
0x11d8   :  { %1483 = vmatmul.mubr.msk.f32.vlgmr.msra.gmra.mrb[12].mxu0 %vm1196_vm8, %v1195_v51 }
0x11d9   :  { %1489 = vmatprep.mubr.msk.f32.mxu0 %vm1796_vm4, %v1793_v0  ;;  %1649 = vmatpush3.bf16.msra.mxu0 %v1648_v55 }
0x11da   :  { %1492 = vmatprep.subr.mxu0 %v1793_v0 }
0x12ab   :  { %v1265_v4 = vpop.f32.mrb[12].mxu0 }
0x12ac   :  { %v1266_v7 = vadd.f32 %v1265_v4, %v1192_v56  ;;  %v1484_v57 = vpop.f32.mrb[13].mxu0 }
0x12ae   :  { %v1269_v39 = vmax.f32 %v1266_v7, 0.0 }
0x12b0   :  { %1490 = vmatmul.mubr.msk.f32.vlgmr.msra.gmra.mrb[14].mxu0 %vm1273_vm9, %v1269_v39 }
0x12b1   :  { %1494 = vmatprep.mubr.msk.f32.mxu0 %vm1796_vm4, %v1793_v0  ;;  %1493 = vmatpush3.msra.mxu0 %v1348_v16 }
0x1383   :  { %v1343_v59 = vpop.f32.mrb[14].mxu0 }
0x1384   :  { %v1344_v60 = vadd.f32 %v1343_v59, %v1272_v58  ;;  %v1491_v61 = vpop.f32.mrb[15].mxu0 }
0x1386   :  { %v1347_v62 = vmax.f32 %v1344_v60, 0.0 }
0x1388   :  { %1495 = vmatmul.mubr.msk.f32.vlgmr.msra.gmra.mrb[16].mxu0 %vm1350_vm10, %v1347_v62 }
0x145b   :  { %v1420_v17 = vpop.f32.mrb[16].mxu0 }
0x145c   :  { %v1421_v63 = vadd.f32 %v1420_v17, %v1349_v48  ;;  %v1496_v1 = vpop.f32.mrb[17].mxu0 }
0x145e   :  { %1425 = vst.msk [vmem:[%s2042_s2] sm:$0x3] %vm1424_vm11, %v1421_v63 }
0x145f   :  { %1430 = vsyncpa [#allocation4], 1 }

</bundles_post_ra>
